<compile_context>
chip_gen: v6e
topology: v6e:2x2x1
jax: 0.10.0
libtpu: 0.0.40
codegen_flags: <defaults>
</compile_context>

<pallas_src>
import functools

import jax
import jax.numpy as jnp
from jax.experimental import pallas as pl
from jax.experimental.pallas import tpu as pltpu


def _attention_gcn_kernel(nv_ref,      # [C,   TE] gathered, pre-linear'd node features
                          ea_ref,      # [D_e, TE] raw edge features
                          WeT_ref,     # [C, D_e]  edge_attr_transform weight (transposed)
                          beT_ref,     # [C, 1]    edge_attr_transform bias (column)
                          R_ref,       # [2C, C]   repeat_interleave duplication matrix
                          w1_ref, b1_ref, w2_ref,   # (1, C) attn-MLP params (VMEM rows)
                          b2_ref,      # (1, 1)
                          out_ref):    # [2C, TE]  lane-dense output tile
    C = nv_ref.shape[0]

    nv = nv_ref[...]                                        # node linear done in wrapper
    # edge_attr_transform on the MXU: [C, D_e] x [D_e, TE] -> [C, TE]
    ea = jnp.dot(WeT_ref[...], ea_ref[...],
                 preferred_element_type=jnp.float32) + beT_ref[...]
    comb = jnp.concatenate([nv, ea], axis=0)                # [2C, TE]

    # attn_mlp on each scalar: a(s) = w2 . relu(w1*s + b1) + b2. Unrolled over the
    # small static hidden width C with independent partial accumulators so the VLIW
    # packer can co-issue on the VALU slots (no 8-deep serial add chain).
    w1 = w1_ref[...]
    b1 = b1_ref[...]
    w2 = w2_ref[...]
    n_acc = min(4, C)
    accs = [None] * n_acc
    for k in range(C):
        term = w2[:, k:k + 1] * jnp.maximum(w1[:, k:k + 1] * comb + b1[:, k:k + 1], 0.0)
        j = k % n_acc
        accs[j] = term if accs[j] is None else accs[j] + term
    logits = functools.reduce(lambda a, b: a + b, accs) + b2_ref[...]

    # softmax over the 2C feature axis (sublanes) — cheap cross-sublane reduction;
    # the divide goes to the EUP via approx reciprocal.
    m = jnp.max(logits, axis=0, keepdims=True)
    e = jnp.exp(logits - m)
    attn = e * pl.reciprocal(jnp.sum(e, axis=0, keepdims=True), approx=True)

    # repeat_interleave(nv, 2, dim=features) as one small MXU matmul with the
    # prebuilt duplication matrix (streamed once, NOT rebuilt every grid step).
    rep = jnp.dot(R_ref[...], nv, preferred_element_type=jnp.float32)   # [2C, TE]

    out_ref[...] = (rep * attn).astype(out_ref.dtype)


@functools.partial(jax.jit, static_argnames=("edge_tile",))
def attention_gcn_conv(x, edge_index, edge_attr, params, *, edge_tile=512):
    N, C_in = x.shape
    E = edge_index.shape[1]
    D_e = edge_attr.shape[1]
    C = params["W_lin"].shape[1]
    assert edge_tile % 128 == 0, "edge_tile must be a multiple of the 128-lane width"

    col = edge_index[1]
    # TODO(synk): torch does `row -= 1`, an in-place mutation of data.edge_index whose
    # result never feeds the returned tensor; intentionally skipped (no functional effect).

    # Hoist the node linear out of the per-edge stream: apply once per node
    # (N*C_in*C FLOPs instead of E*C_in*C), then gather the C-wide rows — this also
    # halves the dominant streamed-input bytes (E*C instead of E*C_in).
    xl = x @ params["W_lin"] + params["b_lin"]              # [N, C]
    xg = jnp.take(xl, col, axis=0)                          # [E, C]  gather = glue

    # Pad the edge axis to whole tiles (tail handled by zero padding + final slice)
    # and go feature-major so the big edge dimension sits on the lane axis.
    n_tiles = pl.cdiv(E, edge_tile)
    E_pad = n_tiles * edge_tile
    nv_T = jnp.pad(xg, ((0, E_pad - E), (0, 0))).T          # [C,   E_pad]
    ea_T = jnp.pad(edge_attr, ((0, E_pad - E), (0, 0))).T   # [D_e, E_pad]

    WeT = params["W_edge"].T                                # [C, D_e]
    beT = params["b_edge"][:, None]                         # [C, 1]

    # Duplication matrix for repeat_interleave(nv, 2, dim=features): R[f, f//2] = 1.
    # Built once here and streamed as a resident constant (index_map (0, 0)).
    R = (jnp.arange(2 * C)[:, None] // 2
         == jnp.arange(C)[None, :]).astype(jnp.float32)     # [2C, C]

    w1 = params["w1"][None, :]                              # (1, C)
    b1 = params["b1"][None, :]
    w2 = params["w2"][None, :]
    b2 = params["b2"][None, :]                              # (1, 1)

    out_T = pl.pallas_call(
        _attention_gcn_kernel,
        out_shape=jax.ShapeDtypeStruct((2 * C, E_pad), jnp.float32),
        grid_spec=pltpu.PrefetchScalarGridSpec(
            num_scalar_prefetch=0,
            grid=(n_tiles,),
            in_specs=[
                pl.BlockSpec((C, edge_tile), lambda i: (0, i)),    # nv_T  (streamed)
                pl.BlockSpec((D_e, edge_tile), lambda i: (0, i)),  # ea_T  (streamed)
                pl.BlockSpec((C, D_e), lambda i: (0, 0)),          # WeT   (resident)
                pl.BlockSpec((C, 1), lambda i: (0, 0)),            # beT   (resident)
                pl.BlockSpec((2 * C, C), lambda i: (0, 0)),        # R     (resident)
                pl.BlockSpec((1, C), lambda i: (0, 0)),            # w1
                pl.BlockSpec((1, C), lambda i: (0, 0)),            # b1
                pl.BlockSpec((1, C), lambda i: (0, 0)),            # w2
                pl.BlockSpec((1, 1), lambda i: (0, 0)),            # b2
            ],
            out_specs=pl.BlockSpec((2 * C, edge_tile), lambda i: (0, i)),
        ),
        # independent edge tiles -> sharded across TensorCores on megacore parts (v7x)
        compiler_params=pltpu.CompilerParams(dimension_semantics=("parallel",)),
    )(nv_T, ea_T, WeT, beT, R, w1, b1, w2, b2)

    # back to the module's edge-major [E, 2C] layout; drop the tail padding
    return out_T.T[:E]


def reference(x, edge_index, edge_attr, p):
    """Pure-JAX transcription of AttentionGCNConv.forward (for verification)."""
    xl = x @ p["W_lin"] + p["b_lin"]
    col = edge_index[1]
    ea = edge_attr @ p["W_edge"] + p["b_edge"]
    nv = xl[col]
    comb = jnp.concatenate([nv, ea], axis=-1)                      # [E, 2C]
    h = jnp.maximum(comb[..., None] * p["w1"] + p["b1"], 0.0)      # [E, 2C, C]
    logits = jnp.sum(h * p["w2"], axis=-1) + p["b2"][0]            # [E, 2C]
    attn = jax.nn.softmax(logits, axis=1)
    rep = jnp.repeat(nv, 2, axis=1)                                # repeat_interleave(..., 2, dim=1)
    return rep * attn


def _init_linear(key, fan_in, fan_out):
    bound = 1.0 / (fan_in ** 0.5)
    kw, kb = jax.random.split(key)
    W = jax.random.uniform(kw, (fan_in, fan_out), jnp.float32, -bound, bound)
    b = jax.random.uniform(kb, (fan_out,), jnp.float32, -bound, bound)
    return W, b


if __name__ == "__main__":
    key = jax.random.PRNGKey(0)
    ks = jax.random.split(key, 8)

    N, E = 64, 1000
    C_in, C_out, D_e = 16, 8, 4

    x = jax.random.normal(ks[0], (N, C_in), jnp.float32)
    edge_attr = jax.random.normal(ks[1], (E, D_e), jnp.float32)
    row = jax.random.randint(ks[2], (E,), 1, N, dtype=jnp.int32)   # rows >= 1 (torch does row -= 1)
    col = jax.random.randint(ks[3], (E,), 0, N, dtype=jnp.int32)
    edge_index = jnp.stack([row, col], axis=0)

    W_lin, b_lin = _init_linear(ks[4], C_in, C_out)    # nn.Linear(in_channels, out_channels)
    W_edge, b_edge = _init_linear(ks[5], D_e, C_out)   # nn.Linear(edge_attr_dim, out_channels)
    W1, b1 = _init_linear(ks[6], 1, C_out)             # nn.Linear(1, out_channels)
    W2, b2 = _init_linear(ks[7], C_out, 1)             # nn.Linear(out_channels, 1)

    params = dict(
        W_lin=W_lin, b_lin=b_lin,
        W_edge=W_edge, b_edge=b_edge,
        w1=W1[0, :], b1=b1,        # (C_out,)
        w2=W2[:, 0], b2=b2,        # (C_out,), (1,)
    )

    out = attention_gcn_conv(x, edge_index, edge_attr, params, edge_tile=512)
    out = jax.block_until_ready(out)

    ref = reference(x, edge_index, edge_attr, params)
    assert out.shape == (E, 2 * C_out), out.shape
    max_err = float(jnp.max(jnp.abs(out - ref)))
    assert jnp.allclose(out, ref, atol=2e-2, rtol=2e-2), f"max abs err {max_err}"
    print("KERNEL_OK")
</pallas_src>

<mosaic_0001>
module attributes {stable_mosaic.version = 11 : i64} {
  func.func @_attention_gcn_kernel(%arg0: i32, %arg1: memref<8x512xf32, #tpu.memory_space<vmem>>, %arg2: memref<4x512xf32, #tpu.memory_space<vmem>>, %arg3: memref<8x4xf32, #tpu.memory_space<vmem>>, %arg4: memref<8x1xf32, #tpu.memory_space<vmem>>, %arg5: memref<16x8xf32, #tpu.memory_space<vmem>>, %arg6: memref<1x8xf32, #tpu.memory_space<vmem>>, %arg7: memref<1x8xf32, #tpu.memory_space<vmem>>, %arg8: memref<1x8xf32, #tpu.memory_space<vmem>>, %arg9: memref<1x1xf32, #tpu.memory_space<vmem>>, %arg10: memref<16x512xf32, #tpu.memory_space<vmem>>) attributes {dimension_semantics = [#tpu.dimension_semantics<parallel>], iteration_bounds = array<i64: 2>, scalar_prefetch = 0 : i64, scratch_operands = 0 : i64, tpu.core_type = #tpu.core_type<tc>, window_params = [{transform_indices = @transform_0, window_bounds = array<i64: 8, 512>}, {transform_indices = @transform_1, window_bounds = array<i64: 4, 512>}, {pipeline_mode = #tpu.pipeline_mode<synchronous>, transform_indices = @transform_2, window_bounds = array<i64: 8, 4>}, {pipeline_mode = #tpu.pipeline_mode<synchronous>, transform_indices = @transform_3, window_bounds = array<i64: 8, 1>}, {pipeline_mode = #tpu.pipeline_mode<synchronous>, transform_indices = @transform_4, window_bounds = array<i64: 16, 8>}, {pipeline_mode = #tpu.pipeline_mode<synchronous>, transform_indices = @transform_5, window_bounds = array<i64: 1, 8>}, {pipeline_mode = #tpu.pipeline_mode<synchronous>, transform_indices = @transform_6, window_bounds = array<i64: 1, 8>}, {pipeline_mode = #tpu.pipeline_mode<synchronous>, transform_indices = @transform_7, window_bounds = array<i64: 1, 8>}, {pipeline_mode = #tpu.pipeline_mode<synchronous>, transform_indices = @transform_8, window_bounds = array<i64: 1, 1>}, {transform_indices = @transform_9, window_bounds = array<i64: 16, 512>}]} {
    %c0 = arith.constant 0 : index
    %c0_0 = arith.constant 0 : index
    %0 = vector.load %arg1[%c0, %c0_0] : memref<8x512xf32, #tpu.memory_space<vmem>>, vector<8x512xf32>
    %c0_1 = arith.constant 0 : index
    %c0_2 = arith.constant 0 : index
    %1 = vector.load %arg3[%c0_1, %c0_2] : memref<8x4xf32, #tpu.memory_space<vmem>>, vector<8x4xf32>
    %c0_3 = arith.constant 0 : index
    %c0_4 = arith.constant 0 : index
    %2 = vector.load %arg2[%c0_3, %c0_4] : memref<4x512xf32, #tpu.memory_space<vmem>>, vector<4x512xf32>
    %cst = arith.constant dense<0.000000e+00> : vector<8x512xf32>
    %3 = tpu.matmul %1, %2, %cst {dimension_numbers = #tpu.dot_dimension_numbers<[1], [0], [0], [1], [0, 0, 1, 1], [], []>} : vector<8x4xf32>, vector<4x512xf32>, vector<8x512xf32> -> vector<8x512xf32>
    %c0_5 = arith.constant 0 : index
    %c0_6 = arith.constant 0 : index
    %4 = vector.load %arg4[%c0_5, %c0_6] : memref<8x1xf32, #tpu.memory_space<vmem>>, vector<8x1xf32>
    %5 = vector.broadcast %4 : vector<8x1xf32> to vector<8x512xf32>
    %6 = arith.addf %3, %5 : vector<8x512xf32>
    %7 = tpu.concatenate %0, %6 in 0 : vector<8x512xf32>, vector<8x512xf32> -> vector<16x512xf32>
    %c0_7 = arith.constant 0 : index
    %c0_8 = arith.constant 0 : index
    %8 = vector.load %arg6[%c0_7, %c0_8] : memref<1x8xf32, #tpu.memory_space<vmem>>, vector<1x8xf32>
    %c0_9 = arith.constant 0 : index
    %c0_10 = arith.constant 0 : index
    %9 = vector.load %arg7[%c0_9, %c0_10] : memref<1x8xf32, #tpu.memory_space<vmem>>, vector<1x8xf32>
    %c0_11 = arith.constant 0 : index
    %c0_12 = arith.constant 0 : index
    %10 = vector.load %arg8[%c0_11, %c0_12] : memref<1x8xf32, #tpu.memory_space<vmem>>, vector<1x8xf32>
    %11 = vector.extract_strided_slice %10 {offsets = [0, 0], sizes = [1, 1], strides = [1, 1]} : vector<1x8xf32> to vector<1x1xf32>
    %12 = vector.extract_strided_slice %8 {offsets = [0, 0], sizes = [1, 1], strides = [1, 1]} : vector<1x8xf32> to vector<1x1xf32>
    %13 = vector.broadcast %12 : vector<1x1xf32> to vector<16x512xf32>
    %14 = arith.mulf %13, %7 : vector<16x512xf32>
    %15 = vector.extract_strided_slice %9 {offsets = [0, 0], sizes = [1, 1], strides = [1, 1]} : vector<1x8xf32> to vector<1x1xf32>
    %16 = vector.broadcast %15 : vector<1x1xf32> to vector<16x512xf32>
    %17 = arith.addf %14, %16 : vector<16x512xf32>
    %cst_13 = arith.constant 0.000000e+00 : f32
    %18 = vector.broadcast %cst_13 : f32 to vector<16x512xf32>
    %19 = arith.maximumf %17, %18 : vector<16x512xf32>
    %20 = vector.broadcast %11 : vector<1x1xf32> to vector<16x512xf32>
    %21 = arith.mulf %20, %19 : vector<16x512xf32>
    %22 = vector.extract_strided_slice %10 {offsets = [0, 1], sizes = [1, 1], strides = [1, 1]} : vector<1x8xf32> to vector<1x1xf32>
    %23 = vector.extract_strided_slice %8 {offsets = [0, 1], sizes = [1, 1], strides = [1, 1]} : vector<1x8xf32> to vector<1x1xf32>
    %24 = vector.broadcast %23 : vector<1x1xf32> to vector<16x512xf32>
    %25 = arith.mulf %24, %7 : vector<16x512xf32>
    %26 = vector.extract_strided_slice %9 {offsets = [0, 1], sizes = [1, 1], strides = [1, 1]} : vector<1x8xf32> to vector<1x1xf32>
    %27 = vector.broadcast %26 : vector<1x1xf32> to vector<16x512xf32>
    %28 = arith.addf %25, %27 : vector<16x512xf32>
    %cst_14 = arith.constant 0.000000e+00 : f32
    %29 = vector.broadcast %cst_14 : f32 to vector<16x512xf32>
    %30 = arith.maximumf %28, %29 : vector<16x512xf32>
    %31 = vector.broadcast %22 : vector<1x1xf32> to vector<16x512xf32>
    %32 = arith.mulf %31, %30 : vector<16x512xf32>
    %33 = vector.extract_strided_slice %10 {offsets = [0, 2], sizes = [1, 1], strides = [1, 1]} : vector<1x8xf32> to vector<1x1xf32>
    %34 = vector.extract_strided_slice %8 {offsets = [0, 2], sizes = [1, 1], strides = [1, 1]} : vector<1x8xf32> to vector<1x1xf32>
    %35 = vector.broadcast %34 : vector<1x1xf32> to vector<16x512xf32>
    %36 = arith.mulf %35, %7 : vector<16x512xf32>
    %37 = vector.extract_strided_slice %9 {offsets = [0, 2], sizes = [1, 1], strides = [1, 1]} : vector<1x8xf32> to vector<1x1xf32>
    %38 = vector.broadcast %37 : vector<1x1xf32> to vector<16x512xf32>
    %39 = arith.addf %36, %38 : vector<16x512xf32>
    %cst_15 = arith.constant 0.000000e+00 : f32
    %40 = vector.broadcast %cst_15 : f32 to vector<16x512xf32>
    %41 = arith.maximumf %39, %40 : vector<16x512xf32>
    %42 = vector.broadcast %33 : vector<1x1xf32> to vector<16x512xf32>
    %43 = arith.mulf %42, %41 : vector<16x512xf32>
    %44 = vector.extract_strided_slice %10 {offsets = [0, 3], sizes = [1, 1], strides = [1, 1]} : vector<1x8xf32> to vector<1x1xf32>
    %45 = vector.extract_strided_slice %8 {offsets = [0, 3], sizes = [1, 1], strides = [1, 1]} : vector<1x8xf32> to vector<1x1xf32>
    %46 = vector.broadcast %45 : vector<1x1xf32> to vector<16x512xf32>
    %47 = arith.mulf %46, %7 : vector<16x512xf32>
    %48 = vector.extract_strided_slice %9 {offsets = [0, 3], sizes = [1, 1], strides = [1, 1]} : vector<1x8xf32> to vector<1x1xf32>
    %49 = vector.broadcast %48 : vector<1x1xf32> to vector<16x512xf32>
    %50 = arith.addf %47, %49 : vector<16x512xf32>
    %cst_16 = arith.constant 0.000000e+00 : f32
    %51 = vector.broadcast %cst_16 : f32 to vector<16x512xf32>
    %52 = arith.maximumf %50, %51 : vector<16x512xf32>
    %53 = vector.broadcast %44 : vector<1x1xf32> to vector<16x512xf32>
    %54 = arith.mulf %53, %52 : vector<16x512xf32>
    %55 = vector.extract_strided_slice %10 {offsets = [0, 4], sizes = [1, 1], strides = [1, 1]} : vector<1x8xf32> to vector<1x1xf32>
    %56 = vector.extract_strided_slice %8 {offsets = [0, 4], sizes = [1, 1], strides = [1, 1]} : vector<1x8xf32> to vector<1x1xf32>
    %57 = vector.broadcast %56 : vector<1x1xf32> to vector<16x512xf32>
    %58 = arith.mulf %57, %7 : vector<16x512xf32>
    %59 = vector.extract_strided_slice %9 {offsets = [0, 4], sizes = [1, 1], strides = [1, 1]} : vector<1x8xf32> to vector<1x1xf32>
    %60 = vector.broadcast %59 : vector<1x1xf32> to vector<16x512xf32>
    %61 = arith.addf %58, %60 : vector<16x512xf32>
    %cst_17 = arith.constant 0.000000e+00 : f32
    %62 = vector.broadcast %cst_17 : f32 to vector<16x512xf32>
    %63 = arith.maximumf %61, %62 : vector<16x512xf32>
    %64 = vector.broadcast %55 : vector<1x1xf32> to vector<16x512xf32>
    %65 = arith.mulf %64, %63 : vector<16x512xf32>
    %66 = arith.addf %21, %65 : vector<16x512xf32>
    %67 = vector.extract_strided_slice %10 {offsets = [0, 5], sizes = [1, 1], strides = [1, 1]} : vector<1x8xf32> to vector<1x1xf32>
    %68 = vector.extract_strided_slice %8 {offsets = [0, 5], sizes = [1, 1], strides = [1, 1]} : vector<1x8xf32> to vector<1x1xf32>
    %69 = vector.broadcast %68 : vector<1x1xf32> to vector<16x512xf32>
    %70 = arith.mulf %69, %7 : vector<16x512xf32>
    %71 = vector.extract_strided_slice %9 {offsets = [0, 5], sizes = [1, 1], strides = [1, 1]} : vector<1x8xf32> to vector<1x1xf32>
    %72 = vector.broadcast %71 : vector<1x1xf32> to vector<16x512xf32>
    %73 = arith.addf %70, %72 : vector<16x512xf32>
    %cst_18 = arith.constant 0.000000e+00 : f32
    %74 = vector.broadcast %cst_18 : f32 to vector<16x512xf32>
    %75 = arith.maximumf %73, %74 : vector<16x512xf32>
    %76 = vector.broadcast %67 : vector<1x1xf32> to vector<16x512xf32>
    %77 = arith.mulf %76, %75 : vector<16x512xf32>
    %78 = arith.addf %32, %77 : vector<16x512xf32>
    %79 = vector.extract_strided_slice %10 {offsets = [0, 6], sizes = [1, 1], strides = [1, 1]} : vector<1x8xf32> to vector<1x1xf32>
    %80 = vector.extract_strided_slice %8 {offsets = [0, 6], sizes = [1, 1], strides = [1, 1]} : vector<1x8xf32> to vector<1x1xf32>
    %81 = vector.broadcast %80 : vector<1x1xf32> to vector<16x512xf32>
    %82 = arith.mulf %81, %7 : vector<16x512xf32>
    %83 = vector.extract_strided_slice %9 {offsets = [0, 6], sizes = [1, 1], strides = [1, 1]} : vector<1x8xf32> to vector<1x1xf32>
    %84 = vector.broadcast %83 : vector<1x1xf32> to vector<16x512xf32>
    %85 = arith.addf %82, %84 : vector<16x512xf32>
    %cst_19 = arith.constant 0.000000e+00 : f32
    %86 = vector.broadcast %cst_19 : f32 to vector<16x512xf32>
    %87 = arith.maximumf %85, %86 : vector<16x512xf32>
    %88 = vector.broadcast %79 : vector<1x1xf32> to vector<16x512xf32>
    %89 = arith.mulf %88, %87 : vector<16x512xf32>
    %90 = arith.addf %43, %89 : vector<16x512xf32>
    %91 = vector.extract_strided_slice %10 {offsets = [0, 7], sizes = [1, 1], strides = [1, 1]} : vector<1x8xf32> to vector<1x1xf32>
    %92 = vector.extract_strided_slice %8 {offsets = [0, 7], sizes = [1, 1], strides = [1, 1]} : vector<1x8xf32> to vector<1x1xf32>
    %93 = vector.broadcast %92 : vector<1x1xf32> to vector<16x512xf32>
    %94 = arith.mulf %93, %7 : vector<16x512xf32>
    %95 = vector.extract_strided_slice %9 {offsets = [0, 7], sizes = [1, 1], strides = [1, 1]} : vector<1x8xf32> to vector<1x1xf32>
    %96 = vector.broadcast %95 : vector<1x1xf32> to vector<16x512xf32>
    %97 = arith.addf %94, %96 : vector<16x512xf32>
    %cst_20 = arith.constant 0.000000e+00 : f32
    %98 = vector.broadcast %cst_20 : f32 to vector<16x512xf32>
    %99 = arith.maximumf %97, %98 : vector<16x512xf32>
    %100 = vector.broadcast %91 : vector<1x1xf32> to vector<16x512xf32>
    %101 = arith.mulf %100, %99 : vector<16x512xf32>
    %102 = arith.addf %54, %101 : vector<16x512xf32>
    %103 = arith.addf %66, %78 : vector<16x512xf32>
    %104 = arith.addf %103, %90 : vector<16x512xf32>
    %105 = arith.addf %104, %102 : vector<16x512xf32>
    %c0_21 = arith.constant 0 : index
    %c0_22 = arith.constant 0 : index
    %106 = vector.load %arg9[%c0_21, %c0_22] : memref<1x1xf32, #tpu.memory_space<vmem>>, vector<1x1xf32>
    %107 = vector.broadcast %106 : vector<1x1xf32> to vector<16x512xf32>
    %108 = arith.addf %105, %107 : vector<16x512xf32>
    %cst_23 = arith.constant dense<0xFF800000> : vector<512xf32>
    %109 = vector.multi_reduction <maximumf>, %108, %cst_23 [0] : vector<16x512xf32> to vector<512xf32>
    %110 = vector.shape_cast %109 : vector<512xf32> to vector<1x512xf32>
    %111 = vector.broadcast %110 : vector<1x512xf32> to vector<16x512xf32>
    %112 = arith.subf %108, %111 : vector<16x512xf32>
    %113 = math.exp %112 : vector<16x512xf32>
    %cst_24 = arith.constant dense<0.000000e+00> : vector<512xf32>
    %114 = vector.multi_reduction <add>, %113, %cst_24 [0] : vector<16x512xf32> to vector<512xf32>
    %115 = vector.shape_cast %114 : vector<512xf32> to vector<1x512xf32>
    %116 = tpu.reciprocal %115 {approx = true} : vector<1x512xf32> -> vector<1x512xf32>
    %117 = vector.broadcast %116 : vector<1x512xf32> to vector<16x512xf32>
    %118 = arith.mulf %113, %117 : vector<16x512xf32>
    %c0_25 = arith.constant 0 : index
    %c0_26 = arith.constant 0 : index
    %119 = vector.load %arg5[%c0_25, %c0_26] : memref<16x8xf32, #tpu.memory_space<vmem>>, vector<16x8xf32>
    %cst_27 = arith.constant dense<0.000000e+00> : vector<16x512xf32>
    %120 = tpu.matmul %119, %0, %cst_27 {dimension_numbers = #tpu.dot_dimension_numbers<[1], [0], [0], [1], [0, 0, 1, 1], [], []>} : vector<16x8xf32>, vector<8x512xf32>, vector<16x512xf32> -> vector<16x512xf32>
    %121 = arith.mulf %120, %118 : vector<16x512xf32>
    %c0_28 = arith.constant 0 : index
    %c0_29 = arith.constant 0 : index
    %122 = vector.load %arg10[%c0_28, %c0_29] : memref<16x512xf32, #tpu.memory_space<vmem>>, vector<16x512xf32>
    tpu.vector_store %arg10[%c0_28, %c0_29], %121 {strides = array<i32>} : memref<16x512xf32, #tpu.memory_space<vmem>>, vector<16x512xf32>,
    return
  }
  func.func @transform_0(%arg0: i32) -> (i32, i32) {
    %c0_i32 = arith.constant 0 : i32
    %c0_i32_0 = arith.constant 0 : i32
    return %c0_i32, %arg0 : i32, i32
  }
  func.func @transform_1(%arg0: i32) -> (i32, i32) {
    %c0_i32 = arith.constant 0 : i32
    %c0_i32_0 = arith.constant 0 : i32
    return %c0_i32, %arg0 : i32, i32
  }
  func.func @transform_2(%arg0: i32) -> (i32, i32) {
    %c0_i32 = arith.constant 0 : i32
    %c0_i32_0 = arith.constant 0 : i32
    %c0_i32_1 = arith.constant 0 : i32
    return %c0_i32, %c0_i32_0 : i32, i32
  }
  func.func @transform_3(%arg0: i32) -> (i32, i32) {
    %c0_i32 = arith.constant 0 : i32
    %c0_i32_0 = arith.constant 0 : i32
    %c0_i32_1 = arith.constant 0 : i32
    return %c0_i32, %c0_i32_0 : i32, i32
  }
  func.func @transform_4(%arg0: i32) -> (i32, i32) {
    %c0_i32 = arith.constant 0 : i32
    %c0_i32_0 = arith.constant 0 : i32
    %c0_i32_1 = arith.constant 0 : i32
    return %c0_i32, %c0_i32_0 : i32, i32
  }
  func.func @transform_5(%arg0: i32) -> (i32, i32) {
    %c0_i32 = arith.constant 0 : i32
    %c0_i32_0 = arith.constant 0 : i32
    %c0_i32_1 = arith.constant 0 : i32
    return %c0_i32, %c0_i32_0 : i32, i32
  }
  func.func @transform_6(%arg0: i32) -> (i32, i32) {
    %c0_i32 = arith.constant 0 : i32
    %c0_i32_0 = arith.constant 0 : i32
    %c0_i32_1 = arith.constant 0 : i32
    return %c0_i32, %c0_i32_0 : i32, i32
  }
  func.func @transform_7(%arg0: i32) -> (i32, i32) {
    %c0_i32 = arith.constant 0 : i32
    %c0_i32_0 = arith.constant 0 : i32
    %c0_i32_1 = arith.constant 0 : i32
    return %c0_i32, %c0_i32_0 : i32, i32
  }
  func.func @transform_8(%arg0: i32) -> (i32, i32) {
    %c0_i32 = arith.constant 0 : i32
    %c0_i32_0 = arith.constant 0 : i32
    %c0_i32_1 = arith.constant 0 : i32
    return %c0_i32, %c0_i32_0 : i32, i32
  }
  func.func @transform_9(%arg0: i32) -> (i32, i32) {
    %c0_i32 = arith.constant 0 : i32
    %c0_i32_0 = arith.constant 0 : i32
    return %c0_i32, %arg0 : i32, i32
  }
}

</mosaic_0001>

<bundles_post_ra>
// kernel: attention_gcn_conv.1
= control target key start
LH: loop header
LB: loop body
LE: loop exit
PB: predicated region body
PF: predicated region fallthrough
CT: control target
= control target key end

     0   :  { %s2187_s0 = inlined_call_operand.vmem [shape: f32[8,1024], index: 0, kind: input, shape index: {}]   ;;  %s2188_s1 = inlined_call_operand.vmem [shape: f32[4,1024], index: 1, kind: input, shape index: {}]   ;;  %s2189_s2 = inlined_call_operand.vmem [shape: f32[8,4], index: 2, kind: input, shape index: {}]   ;;  %s2190_s3 = inlined_call_operand.vmem [shape: f32[8,1], index: 3, kind: input, shape index: {}]   ;;  %s2191_s4 = inlined_call_operand.vmem [shape: f32[16,8], index: 4, kind: input, shape index: {}]   ;;  %s2192_s5 = inlined_call_operand.vmem [shape: f32[1,8], index: 5, kind: input, shape index: {}]   ;;  %s2193_s6 = inlined_call_operand.vmem [shape: f32[1,8], index: 6, kind: input, shape index: {}]   ;;  %s2194_s7 = inlined_call_operand.vmem [shape: f32[1,8], index: 7, kind: input, shape index: {}]   ;;  %s2195_s8 = inlined_call_operand.<no memory space> [shape: f32[1,1], index: 8, kind: input, shape index: {}]   ;;  %s2196_s9 = inlined_call_operand.hbm [shape: f32[16,1024], index: 9, kind: output, shape index: {}]  }
   0x1   :  { %v14_v0 = vstv %s2195_s8 }
   0x2   :  { %15 = vst [vmem:[#allocation2] sm:$0x1] %v14_v0 }
   0x3   :  { %16 = vsyncpa [#allocation4], 0 }
   0x4   :  { %18 = vsyncpa [#allocation4 + $0x1], 0  ;;  %s1590_s11 = smov 0   ;;  %s1592_s12 = smov 0  }
   0x5   :  { %s1594_s13 = smov 0   ;;  %s1596_s14 = smov 0  }
   0x6 LB: > { %s1611_s8 = sadd.s32 4294967295, %s1522_s14   ;;  %s1333_s15 = sadd.s32 4294967294, %s1522_s14   ;;  %s1522_s14 = sphi %s1596_s14, %s2234_s14   ;;  %s1518_s13 = sphi %s1594_s13, %s2233_s13   ;;  %s1514_s12 = sphi %s1592_s12, %s2232_s12   ;;  %s1510_s11 = sphi %s1590_s11, %s2231_s11  }
   0x7   : > { %s1615_s16 = sadd.s32 1, %s1522_s14   ;;  %s230_s17 = sadd.s32 1, %s1518_s13 }
   0x8   : > { %s227_s18 = ssub.s32 %s1522_s14, %s1615_s16  ;;  %p240_p0 = scmp.ne.s32.totalorder %s1518_s13, %s1514_s12 }
   0x9   : > { %p228_p1 = scmp.eq.s32.totalorder %s227_s18, 0  ;;  %p241_p2 = scmp.eq.s32.totalorder %s1611_s8, 1 }
   0xa   : > { %p246_p3 = scmp.ne.s32.totalorder %s1514_s12, %s1510_s11  ;;  %p247_p4 = scmp.eq.s32.totalorder %s1333_s15, 1 }
   0xb   : > { %s1626_s19 = scalar_select %p228_p1, %s1518_s13, %s230_s17  }
   0xc   : > { %p1628_p5 = por %p241_p2, %p240_p0  ;;  %p1632_p6 = por %p247_p4, %p246_p3 }
   0xd   : > { %p1336_p7 = scmp.ge.s32.totalorder %s1522_s14, 1  ;;  %p304_p8 = scmp.lt.s32.totalorder %s1522_s14, 3 }
   0xf   : > { %p305_p9 = pnand %p1336_p7, %p304_p8 }
  0x11   : > { %308 = sbr.rel (%p305_p9) target bundleno = 355 (0x163), region = 56 }
  0x16   : > { %v1641_v1 = vld [vmem:[%s2192_s5] ss:$0 sm:$0xff]  ;;  %s1338_s24 = sshll.u32 %s1611_s8, 2  ;;  %v1524_v2 = vmov 1   ;;  %v1525_v3 = vmov 5   ;;  %v1526_v4 = vmov 0.0  }
  0x17   : > { %1413 = vset.pattern.permute.xlu1 %v1524_v2  ;;  %1415 = vset.pattern.permute.xlu0 %v1525_v3  ;;  %p346_p10 = scmp.lt.s32.totalorder %s1338_s24, 7  ;;  %v1527_v5 = vmov 4   ;;  %v1528_v6 = vmov 6   ;;  %vm379_vm0 = vcmask 1043456   ;;  %v1660_v11 = vld [vmem:[%s2193_s6] ss:$0 sm:$0xff] }
  0x18   : > { %593 = vperm.xlu1 %1413, %v1641_v1   ;;  %777 = vperm.xlu0 %1415, %v1641_v1   ;;  %v362_v12 = vld [vmem:[%s2189_s2] sm:$0xff]  ;;  %vm375_vm1 = vcmask 31744   ;;  %v1529_v14 = vmov 0   ;;  %vm1068_vm2 = vcmask 64512   ;;  %v1067_v20 = vld [vmem:[%s2191_s4 + $0x8] sm:$0xff]  ;;  %v1530_v22 = vmov 2  }
  0x19   : > { %s2236_s24 = smov (!%p346_p10, %s1338_s24), 7  ;;  %452 = vmatprep.mubr.f32.mxu0 %v1526_v4  ;;  %523 = vmatprep.mubr.f32.mxu1 %v1526_v4  ;;  %v365_v18 = vld [vmem:[%s2190_s3] sm:$0xff]  ;;  %v1531_v23 = vmov 3   ;;  %v1532_v24 = vmov 7   ;;  %s1361_s23 = sshll.u32 %s1611_s8, 9 }
  0x1a   : > { %s1341_s25 = sshll.u32 %s2236_s24, 2  ;;  %s1339_s26 = sshll.u32 %s2236_s24, 3  ;;  %v1066_v19 = vld [vmem:[%s2191_s4] sm:$0xff] }
  0x1b   : > { %s355_s29 = scalar_lea.vmem %s2188_s1, %s1341_s25  ;;  %s349_s15 = scalar_lea.vmem %s2187_s0, %s1339_s26  ;;  %v1350_v21 = vld [vmem:[%s2194_s7] ss:$0 sm:$0xff] }
  0x1c   : > { %1414 = vset.pattern.permute.xlu1 %v1527_v5  ;;  %1420 = vset.pattern.permute.xlu0 %v1528_v6  ;;  %v363_v7 = vld [vmem:[%s355_s29] sm:$0xff]  ;;  %v364_v8 = vld [vmem:[%s355_s29 + $0x8] sm:$0xff]  ;;  %v1673_v16 = vld [vmem:[%s349_s15 + $0x18] sm:$0xff]  ;;  %s2143_s26 = scalar_lea.hbm %s2196_s9, %s1361_s23  ;;  %s1533_s28 = smov [#allocation3]  }
  0x1d   : > { %725 = vperm.xlu1 %1414, %v1641_v1   ;;  %829 = vperm.xlu0 %1420, %v1641_v1   ;;  %v373_v9 = vcombine.high %v363_v7, %v363_v7  ;;  %v374_v10 = vcombine.high %v364_v8, %v364_v8  ;;  %v1667_v13 = vld [vmem:[%s349_s15 + $0x8] sm:$0xff]  ;;  %v1671_v15 = vld [vmem:[%s349_s15] sm:$0xff]  ;;  %v1677_v17 = vld [vmem:[%s349_s15 + $0x10] sm:$0xff]  ;;  %s342_s15 = sand.u32 1, %s1514_s12   ;;  %s1466_s29 = sshll.u32 %s1533_s28, 4  ;;  %s1467_s29 = int_to_ptr.vmem [resolvable:$false] %s1466_s29 }
  0x1e   : > { %v1351_v25 = vld [vmem:[#allocation2] ss:$0 sm:$0xff]  ;;  %s1337_s17 = sshll.u32 %s342_s15, 6  ;;  %s2147_s8 = scalar_lea.sflag [#allocation4], %s342_s15 }
  0x1f   : > { %1342 = vmatprep.subr.msk.mxu0 %vm379_vm0, %v373_v9  ;;  %1345 = vmatprep.subr.msk.mxu1 %vm379_vm0, %v374_v10  ;;  %s344_s18 = scalar_lea.vmem [#allocation3], %s1337_s17  ;;  %s1468_s30 = scalar_lea.vmem %s1467_s29, 2048 }
  0x20   : > { %1343 = vmatpush1.msk.msra.mxu0 %vm379_vm0, %v363_v7  ;;  %1346 = vmatpush1.msk.msra.mxu1 %vm379_vm0, %v364_v8  ;;  %s1259_s22 = sshll.u32 %s344_s18, 4  ;;  %s2138_s22 = int_to_ptr.vmem [resolvable:$true] %s1259_s22 }
  0x21   : > { %1416 = vset.pattern.permute.xlu1 %v1529_v14  ;;  %1344 = vmatmul.mubr.msk.f32.vlgmr.msra.gmra.mxu0 %vm375_vm1, %v362_v12  ;;  %s1462_s27 = scalar_lea.vmem %s2138_s22, 1024  ;;  %p1469_p0 = scmp.lt.s32.totalorder %s2138_s22, %s1467_s29 }
  0x22   : > { %556 = vperm.xlu1 %1416, %v1660_v11   ;;  %1347 = vmatmul.mubr.msk.f32.vlgmr.msra.gmra.mxu1 %vm375_vm1, %v362_v12  ;;  %p1463_p11 = scmp.ne.s32.totalorder %s2138_s22, %s1462_s27  ;;  %p1470_p1 = scmp.lt.s32.totalorder %s1468_s30, %s1462_s27 }
  0x23   : > { %841 = vperm.xlu0 %1420, %v1660_v11   ;;  %1105 = vmatprep.subr.mxu0 %v1667_v13 }
  0x24   : > { %1182 = vmatprep.subr.mxu1 %v1673_v16  ;;  %1106 = vmatpush1.msra.mxu0 %v1671_v15  ;;  %p1464_p12 = pnand %p1463_p11, %p1628_p5  ;;  %p1471_p2 = por %p1470_p1, %p1469_p0 }
  0x25   : > { %1183 = vmatpush1.msra.mxu1 %v1677_v17  ;;  %1139 = vmatprep.mubr.f32.mxu0 %v1526_v4 }
  0x26   : > { %1417 = vset.pattern.permute.xlu1 %v1524_v2  ;;  %1216 = vmatprep.mubr.f32.mxu1 %v1526_v4  ;;  %p1465_p13 = pneg %p1464_p12 }
  0x27   : > { %605 = vperm.xlu1 %1417, %v1660_v11   ;;  %1423 = vset.pattern.permute.xlu0 %v1529_v14 }
  0x28   : > { %368 = vperm.xlu0 %1423, %v365_v18   ;;  %1352 = vmatmul.mubr.msk.f32.vlgmr.msra.gmra.mxu0 %vm1068_vm2, %v1066_v19  ;;  %p1472_p3 = pnand %p1471_p2, %p1465_p13 }
  0x29   : > { %1354 = vmatmul.mubr.msk.f32.vlgmr.msra.gmra.mxu1 %vm1068_vm2, %v1066_v19  ;;  %1145 = vmatprep.mubr.f32.mxu0 %v1526_v4 }
  0x2a   : > { %1222 = vmatprep.mubr.f32.mxu1 %v1526_v4 }
  0x2b   : > { %1418 = vset.pattern.permute.xlu1 %v1527_v5 }
  0x2c   : > { %737 = vperm.xlu1 %1418, %v1660_v11   ;;  %539 = vperm.xlu0 %1423, %v1641_v1  }
  0x2d   : > { %1353 = vmatmul.mubr.msk.f32.gmra.mxu0 %vm1068_vm2, %v1067_v20  ;;  %1355 = vmatmul.mubr.msk.f32.gmra.mxu1 %vm1068_vm2, %v1067_v20 }
  0x30   : > { %1419 = vset.pattern.permute.xlu1 %v1525_v3  ;;  %581 = vperm.xlu0 %1423, %v1350_v21  }
  0x31   : > { %789 = vperm.xlu1 %1419, %v1660_v11  }
  0x34   : > { %1427 = vset.pattern.permute.xlu0 %v1527_v5 }
  0x35   : > { %1421 = vset.pattern.permute.xlu1 %v1530_v22  ;;  %757 = vperm.xlu0 %1427, %v1350_v21  }
  0x36   : > { %649 = vperm.xlu1 %1421, %v1660_v11  }
  0x39   : > { %1428 = vset.pattern.permute.xlu0 %v1530_v22 }
  0x3a   : > { %1422 = vset.pattern.permute.xlu1 %v1531_v23  ;;  %637 = vperm.xlu0 %1428, %v1641_v1  }
  0x3b   : > { %681 = vperm.xlu1 %1422, %v1641_v1  }
  0x3e   : > { %669 = vperm.xlu0 %1428, %v1350_v21  }
  0x3f   : > { %1424 = vset.pattern.permute.xlu1 %v1532_v24 }
  0x40   : > { %881 = vperm.xlu1 %1424, %v1641_v1  }
  0x42   : > { %1433 = vset.pattern.permute.xlu0 %v1532_v24 }
  0x43   : > { %913 = vperm.xlu0 %1433, %v1350_v21  }
  0x44   : > { %1425 = vset.pattern.permute.xlu1 %v1524_v2 }
  0x45   : > { %625 = vperm.xlu1 %1425, %v1350_v21  }
  0x47   : > { %1435 = vset.pattern.permute.xlu0 %v1529_v14 }
  0x49   : > { %1426 = vset.pattern.permute.xlu1 %v1531_v23 }
  0x4a   : > { %693 = vperm.xlu1 %1426, %v1660_v11  }
  0x4e   : > { %1429 = vset.pattern.permute.xlu1 %v1525_v3 }
  0x4f   : > { %809 = vperm.xlu1 %1429, %v1350_v21  }
  0x53   : > { %1430 = vset.pattern.permute.xlu1 %v1532_v24 }
  0x54   : > { %893 = vperm.xlu1 %1430, %v1660_v11  }
  0x58   : > { %1431 = vset.pattern.permute.xlu1 %v1528_v6 }
  0x59   : > { %861 = vperm.xlu1 %1431, %v1350_v21  }
  0x5d   : > { %1432 = vset.pattern.permute.xlu1 %v1531_v23 }
  0x5e   : > { %713 = vperm.xlu1 %1432, %v1350_v21  }
  0x62   : > { %1434 = vset.pattern.permute.xlu1 %v1529_v14 }
  0x63   : > { %963 = vperm.xlu1 %1434, %v1351_v25  }
  0x93   : > { %v1718_v26 = vpop.permute.xlu1 %593  ;;  %v1724_v29 = vpop.permute.xlu0 %777 }
  0x94   : > { %v596_v45 = vmul.f32 %v1718_v26, %v1671_v15  ;;  %v597_v46 = vmul.f32 %v1718_v26, %v1667_v13  ;;  %v598_v47 = vmul.f32 %v1718_v26, %v1677_v17  ;;  %v599_v48 = vmul.f32 %v1718_v26, %v1673_v16 }
  0x95   : > { %v780_v49 = vmul.f32 %v1724_v29, %v1671_v15  ;;  %v781_v50 = vmul.f32 %v1724_v29, %v1667_v13  ;;  %v782_v51 = vmul.f32 %v1724_v29, %v1677_v17  ;;  %v783_v52 = vmul.f32 %v1724_v29, %v1673_v16 }
  0x98   : > { %v1720_v27 = vpop.permute.xlu1 %725  ;;  %v1728_v31 = vpop.permute.xlu0 %829 }
  0x99   : > { %v832_v41 = vmul.f32 %v1728_v31, %v1671_v15  ;;  %v833_v42 = vmul.f32 %v1728_v31, %v1667_v13  ;;  %v834_v43 = vmul.f32 %v1728_v31, %v1677_v17  ;;  %v835_v44 = vmul.f32 %v1728_v31, %v1673_v16 }
  0x9a   : > { %v728_v63 = vmul.f32 %v1720_v27, %v1671_v15  ;;  %v729_v0 = vmul.f32 %v1720_v27, %v1667_v13  ;;  %v730_v1 = vmul.f32 %v1720_v27, %v1677_v17  ;;  %v731_v2 = vmul.f32 %v1720_v27, %v1673_v16 }
  0x9d   : > { %v1722_v28 = vpop.permute.xlu1 %556 }
  0x9e   : > { %v1732_v33 = vpop.permute.xlu0 %841 }
  0x9f   : > { %v1773_v53 = vadd.f32 %v1732_v33, %v832_v41  ;;  %v1776_v54 = vadd.f32 %v1732_v33, %v833_v42  ;;  %v1785_v58 = vadd.f32 %v1732_v33, %v834_v43  ;;  %v1788_v59 = vadd.f32 %v1732_v33, %v835_v44 }
  0xa2   : > { %v1726_v30 = vpop.permute.xlu1 %605 }
  0xa3   : > { %v1736_v35 = vpop.permute.xlu0 %368  ;;  %v1805_v3 = vadd.f32 %v1726_v30, %v596_v45  ;;  %v1808_v4 = vadd.f32 %v1726_v30, %v597_v46  ;;  %v1811_v5 = vadd.f32 %v1726_v30, %v598_v47  ;;  %v1814_v6 = vadd.f32 %v1726_v30, %v599_v48 }
  0xa5   : > { %v616_v25 = vmax.f32 %v1805_v3, 0.0 }
  0xa7   : > { %v1730_v32 = vpop.permute.xlu1 %737  ;;  %v1740_v37 = vpop.permute.xlu0 %539 }
  0xa8   : > { %v542_v55 = vmul.f32 %v1740_v37, %v1671_v15  ;;  %v543_v56 = vmul.f32 %v1740_v37, %v1667_v13  ;;  %v544_v60 = vmul.f32 %v1740_v37, %v1677_v17  ;;  %v545_v61 = vmul.f32 %v1740_v37, %v1673_v16 }
  0xa9   : > { %v740_v21 = vadd.f32 %v1730_v32, %v728_v63  ;;  %v741_v22 = vadd.f32 %v1730_v32, %v729_v0  ;;  %v742_v23 = vadd.f32 %v1730_v32, %v730_v1  ;;  %v743_v24 = vadd.f32 %v1730_v32, %v731_v2 }
  0xaa   : > { %v559_v9 = vadd.f32 %v1722_v28, %v542_v55  ;;  %v560_v10 = vadd.f32 %v1722_v28, %v543_v56  ;;  %v561_v18 = vadd.f32 %v1722_v28, %v544_v60  ;;  %v562_v19 = vadd.f32 %v1722_v28, %v545_v61 }
  0xab   : > { %v1746_v40 = vpop.permute.xlu0 %581  ;;  %v748_v61 = vmax.f32 %v740_v21, 0.0  ;;  %v749_v63 = vmax.f32 %v741_v22, 0.0  ;;  %v750_v0 = vmax.f32 %v742_v23, 0.0  ;;  %v751_v1 = vmax.f32 %v743_v24, 0.0 }
  0xac   : > { %v1734_v34 = vpop.permute.xlu1 %789  ;;  %v567_v44 = vmax.f32 %v559_v9, 0.0  ;;  %v568_v45 = vmax.f32 %v560_v10, 0.0  ;;  %v569_v48 = vmax.f32 %v561_v18, 0.0  ;;  %v570_v55 = vmax.f32 %v562_v19, 0.0 }
  0xad   : > { %v792_v9 = vadd.f32 %v1734_v34, %v780_v49  ;;  %v793_v10 = vadd.f32 %v1734_v34, %v781_v50  ;;  %v794_v14 = vadd.f32 %v1734_v34, %v782_v51  ;;  %v795_v18 = vadd.f32 %v1734_v34, %v783_v52 }
  0xae   : > { %v584_v19 = vmul.f32 %v1746_v40, %v567_v44  ;;  %v585_v8 = vmul.f32 %v1746_v40, %v568_v45  ;;  %v586_v22 = vmul.f32 %v1746_v40, %v569_v48  ;;  %v587_v23 = vmul.f32 %v1746_v40, %v570_v55 }
  0xaf   : > { %v802_v7 = vmax.f32 %v794_v14, 0.0  ;;  %v803_v48 = vmax.f32 %v795_v18, 0.0 }
  0xb0   : > { %v1794_v62 = vpop.permute.xlu0 %757 }
  0xb1   : > { %v1738_v36 = vpop.permute.xlu1 %649  ;;  %v760_v51 = vmul.f32 %v1794_v62, %v748_v61  ;;  %v761_v52 = vmul.f32 %v1794_v62, %v749_v63  ;;  %v762_v24 = vmul.f32 %v1794_v62, %v750_v0  ;;  %v763_v44 = vmul.f32 %v1794_v62, %v751_v1 }
  0xb3   : > { %v768_v14 = vadd.f32 %v760_v51, %v584_v19  ;;  %v769_v18 = vadd.f32 %v761_v52, %v585_v8  ;;  %v770_v43 = vadd.f32 %v762_v24, %v586_v22  ;;  %v771_v42 = vadd.f32 %v763_v44, %v587_v23 }
  0xb4   : > { %v2209_v52 = vmax.f32 %v1808_v4, 0.0 }
  0xb5   : > { %v1826_v20 = vpop.permute.xlu0 %637 }
  0xb6   : > { %v1742_v38 = vpop.permute.xlu1 %681  ;;  %v640_v46 = vmul.f32 %v1826_v20, %v1671_v15  ;;  %v641_v47 = vmul.f32 %v1826_v20, %v1667_v13  ;;  %v642_v56 = vmul.f32 %v1826_v20, %v1677_v17  ;;  %v643_v60 = vmul.f32 %v1826_v20, %v1673_v16 }
  0xb7   : > { %v684_v63 = vmul.f32 %v1742_v38, %v1671_v15  ;;  %v686_v0 = vmul.f32 %v1742_v38, %v1677_v17  ;;  %v685_v41 = vmul.f32 %v1742_v38, %v1667_v13 }
  0xb8   : > { %v652_v12 = vadd.f32 %v1738_v36, %v640_v46  ;;  %v653_v21 = vadd.f32 %v1738_v36, %v641_v47  ;;  %v654_v49 = vadd.f32 %v1738_v36, %v642_v56  ;;  %v655_v50 = vadd.f32 %v1738_v36, %v643_v60 }
  0xb9   : > { %v800_v46 = vmax.f32 %v792_v9, 0.0  ;;  %v801_v47 = vmax.f32 %v793_v10, 0.0  ;;  %v1872_v1 = vpop.permute.xlu0 %669 }
  0xba   : > { %v660_v60 = vmax.f32 %v652_v12, 0.0  ;;  %v661_v61 = vmax.f32 %v653_v21, 0.0  ;;  %2207 = vst [vmem:[#allocation7_spill] sm:$0xff] %v1872_v1  ;;  %v662_v9 = vmax.f32 %v654_v49, 0.0  ;;  %v663_v10 = vmax.f32 %v655_v50, 0.0 }
  0xbb   : > { %v1744_v39 = vpop.permute.xlu1 %881  ;;  %v687_v12 = vmul.f32 %v1742_v38, %v1673_v16 }
  0xbc   : > { %v884_v55 = vmul.f32 %v1744_v39, %v1671_v15  ;;  %v886_v56 = vmul.f32 %v1744_v39, %v1677_v17  ;;  %v885_v15 = vmul.f32 %v1744_v39, %v1667_v13  ;;  %v887_v17 = vmul.f32 %v1744_v39, %v1673_v16 }
  0xbd   : > { %v672_v49 = vmul.f32 %v1872_v1, %v660_v60  ;;  %v673_v8 = vmul.f32 %v1872_v1, %v661_v61  ;;  %v674_v51 = vmul.f32 %v1872_v1, %v662_v9  ;;  %v675_v13 = vmul.f32 %v1872_v1, %v663_v10 }
  0xbe   : > { %v2211_v61 = vmax.f32 %v1814_v6, 0.0 }
  0xc0   : > { %v1782_v57 = vpop.permute.xlu1 %625 }
  0xc1   : > { %v628_v16 = vmul.f32 %v1782_v57, %v616_v25  ;;  %v629_v24 = vmul.f32 %v1782_v57, %v2209_v52 }
  0xc5   : > { %v1820_v11 = vpop.permute.xlu1 %693 }
  0xc6   : > { %v696_v23 = vadd.f32 %v1820_v11, %v684_v63  ;;  %v698_v50 = vadd.f32 %v1820_v11, %v686_v0  ;;  %v631_v63 = vmul.f32 %v1782_v57, %v2211_v61  ;;  %v697_v4 = vadd.f32 %v1820_v11, %v685_v41 }
  0xc7   : > { %v699_v0 = vadd.f32 %v1820_v11, %v687_v12  ;;  %v2213_v12 = vmax.f32 %v1785_v58, 0.0 }
  0xc8   : > { %v704_v10 = vmax.f32 %v696_v23, 0.0 }
  0xca   : > { %v1844_v2 = vpop.permute.xlu1 %809 }
  0xcb   : > { %2206 = vst [vmem:[#allocation6_spill] sm:$0xff] %v1844_v2  ;;  %v812_v44 = vmul.f32 %v1844_v2, %v800_v46  ;;  %v815_v52 = vmul.f32 %v1844_v2, %v803_v48  ;;  %v2215_v48 = vmax.f32 %v1788_v59, 0.0 }
  0xcd   : > { %v820_v61 = vadd.f32 %v812_v44, %v628_v16 }
  0xcf   : > { %v1862_v45 = vpop.permute.xlu1 %893 }
  0xd0   : > { %v896_v19 = vadd.f32 %v1862_v45, %v884_v55  ;;  %v898_v22 = vadd.f32 %v1862_v45, %v886_v56  ;;  %v814_v55 = vmul.f32 %v1844_v2, %v802_v7  ;;  %v2210_v56 = vmax.f32 %v1811_v5, 0.0 }
  0xd1   : > { %v897_v3 = vadd.f32 %v1862_v45, %v885_v15  ;;  %v899_v25 = vadd.f32 %v1862_v45, %v887_v17  ;;  %v706_v7 = vmax.f32 %v698_v50, 0.0  ;;  %v813_v5 = vmul.f32 %v1844_v2, %v801_v47 }
  0xd2   : > { %v630_v60 = vmul.f32 %v1782_v57, %v2210_v56  ;;  %v904_v9 = vmax.f32 %v896_v19, 0.0  ;;  %v906_v46 = vmax.f32 %v898_v22, 0.0  ;;  %v1912_v56 = vpop.permute.xlu0 %913  ;;  %v2212_v17 = vmax.f32 %v1773_v53, 0.0 }
  0xd3   : > { %v2214_v22 = vmax.f32 %v1776_v54, 0.0  ;;  %v905_v50 = vmax.f32 %v897_v3, 0.0  ;;  %v907_v1 = vmax.f32 %v899_v25, 0.0  ;;  %v823_v54 = vadd.f32 %v815_v52, %v631_v63 }
  0xd4   : > { %v1882_v21 = vpop.permute.xlu1 %861  ;;  %v822_v15 = vadd.f32 %v814_v55, %v630_v60  ;;  %v916_v16 = vmul.f32 %v1912_v56, %v904_v9  ;;  %v918_v53 = vmul.f32 %v1912_v56, %v906_v46  ;;  %v705_v55 = vmax.f32 %v697_v4, 0.0 }
  0xd5   : > { %2208 = vst [vmem:[#allocation8_spill] sm:$0xff] %v1882_v21  ;;  %v864_v41 = vmul.f32 %v1882_v21, %v2212_v17  ;;  %v866_v19 = vmul.f32 %v1882_v21, %v2213_v12  ;;  %v865_v47 = vmul.f32 %v1882_v21, %v2214_v22  ;;  %v867_v23 = vmul.f32 %v1882_v21, %v2215_v48 }
  0xd6   : > { %v707_v60 = vmax.f32 %v699_v0, 0.0  ;;  %v821_v17 = vadd.f32 %v813_v5, %v629_v24  ;;  %v932_v2 = vadd.f32 %v820_v61, %v768_v14  ;;  %v934_v59 = vadd.f32 %v822_v15, %v770_v43 }
  0xd7   : > { %v872_v12 = vadd.f32 %v864_v41, %v672_v49  ;;  %v874_v22 = vadd.f32 %v866_v19, %v674_v51  ;;  %v917_v48 = vmul.f32 %v1912_v56, %v905_v50  ;;  %v873_v25 = vadd.f32 %v865_v47, %v673_v8 }
  0xd8   : > { %v875_v9 = vadd.f32 %v867_v23, %v675_v13  ;;  %v919_v46 = vmul.f32 %v1912_v56, %v907_v1  ;;  %v933_v4 = vadd.f32 %v821_v17, %v769_v18  ;;  %v935_v0 = vadd.f32 %v823_v54, %v771_v42 }
  0xd9   : > { %v1914_v6 = vpop.permute.xlu1 %713  ;;  %v940_v24 = vadd.f32 %v932_v2, %v872_v12  ;;  %v942_v63 = vadd.f32 %v934_v59, %v874_v22 }
  0xda   : > { %v716_v44 = vmul.f32 %v1914_v6, %v704_v10  ;;  %v718_v58 = vmul.f32 %v1914_v6, %v706_v7  ;;  %v717_v3 = vmul.f32 %v1914_v6, %v705_v55  ;;  %v719_v10 = vmul.f32 %v1914_v6, %v707_v60 }
  0xdb   : > { %v1938_v43 = vadd.f32 %v933_v4, %v873_v25  ;;  %v1940_v5 = vadd.f32 %v935_v0, %v875_v9 }
  0xdc   : > { %v924_v21 = vadd.f32 %v916_v16, %v716_v44  ;;  %v926_v7 = vadd.f32 %v918_v53, %v718_v58  ;;  %v1936_v14 = vadd.f32 %v917_v48, %v717_v3  ;;  %v1943_v13 = vadd.f32 %v919_v46, %v719_v10 }
  0xdd   : > { %2216 = vst [vmem:[#allocation9_spill] sm:$0xff] %v1940_v5 }
  0xde   : > { %2217 = vst [vmem:[#allocation10_spill] sm:$0xff] %v1943_v13  ;;  %v948_v1 = vadd.f32 %v940_v24, %v924_v21  ;;  %v1945_v52 = vadd.f32 %v942_v63, %v926_v7  ;;  %v1952_v41 = vpop.permute.xlu1 %963 }
  0xe0   : > { %v1973_v54 = vadd.f32 %v1952_v41, %v948_v1 }
  0xe1   : > { %v454_v49 = vpop.f32.mrf.mxu0 }
  0xe2   : > { %v525_v51 = vpop.f32.mrf.mxu1  ;;  %v455_v8 = vadd.f32 %v454_v49, %v1736_v35  ;;  %2218 = vst [vmem:[#allocation11_spill] sm:$0xff] %v1973_v54 }
  0xe3   : > { %v526_v18 = vadd.f32 %v525_v51, %v1736_v35 }
  0xe4   : > { %v546_v42 = vmul.f32 %v1740_v37, %v455_v8  ;;  %v600_v2 = vmul.f32 %v1718_v26, %v455_v8  ;;  %v644_v61 = vmul.f32 %v1826_v20, %v455_v8  ;;  %v688_v15 = vmul.f32 %v1742_v38, %v455_v8 }
  0xe5   : > { %v732_v19 = vmul.f32 %v1720_v27, %v455_v8  ;;  %v784_v47 = vmul.f32 %v1724_v29, %v455_v8  ;;  %v836_v21 = vmul.f32 %v1728_v31, %v455_v8  ;;  %v888_v23 = vmul.f32 %v1744_v39, %v455_v8 }
  0xe6   : > { %v563_v50 = vadd.f32 %v1722_v28, %v546_v42  ;;  %v612_v16 = vadd.f32 %v1726_v30, %v600_v2  ;;  %v656_v53 = vadd.f32 %v1738_v36, %v644_v61  ;;  %v1962_v44 = vadd.f32 %v1820_v11, %v688_v15 }
  0xe7   : > { %v744_v58 = vadd.f32 %v1730_v32, %v732_v19  ;;  %v796_v55 = vadd.f32 %v1734_v34, %v784_v47  ;;  %v1967_v60 = vadd.f32 %v1732_v33, %v836_v21  ;;  %v1970_v17 = vadd.f32 %v1862_v45, %v888_v23 }
  0xe8   : > { %v571_v12 = vmax.f32 %v563_v50, 0.0  ;;  %v620_v22 = vmax.f32 %v612_v16, 0.0  ;;  %v664_v59 = vmax.f32 %v656_v53, 0.0  ;;  %v708_v48 = vmax.f32 %v1962_v44, 0.0  ;;  %v456_v16 = vpop.f32.mrf.mxu0  ;;  %v2219_v53 = vld [vmem:[#allocation6_spill] sm:$0xff] }
  0xe9   : > { %v752_v3 = vmax.f32 %v744_v58, 0.0  ;;  %v804_v25 = vmax.f32 %v796_v55, 0.0  ;;  %v548_v7 = vmul.f32 %v1740_v37, %v526_v18  ;;  %v602_v4 = vmul.f32 %v1718_v26, %v526_v18 }
  0xea   : > { %v1978_v46 = vmul.f32 %v1746_v40, %v571_v12  ;;  %v1984_v0 = vmul.f32 %v1782_v57, %v620_v22  ;;  %v646_v63 = vmul.f32 %v1826_v20, %v526_v18  ;;  %v690_v49 = vmul.f32 %v1742_v38, %v526_v18  ;;  %v527_v22 = vpop.f32.mrf.mxu1 }
  0xeb   : > { %v1987_v24 = vmul.f32 %v1794_v62, %v752_v3  ;;  %v565_v51 = vadd.f32 %v1722_v28, %v548_v7  ;;  %v614_v8 = vadd.f32 %v1726_v30, %v602_v4  ;;  %v734_v1 = vmul.f32 %v1720_v27, %v526_v18 }
  0xec   : > { %v786_v42 = vmul.f32 %v1724_v29, %v526_v18  ;;  %v1996_v2 = vadd.f32 %v1738_v36, %v646_v63  ;;  %v1999_v61 = vadd.f32 %v1820_v11, %v690_v49  ;;  %v838_v15 = vmul.f32 %v1728_v31, %v526_v18 }
  0xed   : > { %v890_v19 = vmul.f32 %v1744_v39, %v526_v18  ;;  %v573_v47 = vmax.f32 %v565_v51, 0.0  ;;  %v622_v21 = vmax.f32 %v614_v8, 0.0  ;;  %v746_v23 = vadd.f32 %v1730_v32, %v734_v1 }
  0xee   : > { %v798_v50 = vadd.f32 %v1734_v34, %v786_v42  ;;  %v2006_v44 = vmul.f32 %v2219_v53, %v804_v25  ;;  %v2010_v55 = vadd.f32 %v1732_v33, %v838_v15  ;;  %v457_v51 = vadd.f32 %v456_v16, %v1736_v35  ;;  %v2220_v15 = vld [vmem:[#allocation7_spill] sm:$0xff] }
  0xef   : > { %v2013_v12 = vadd.f32 %v1862_v45, %v890_v19  ;;  %v2016_v18 = vmul.f32 %v1746_v40, %v573_v47  ;;  %v754_v7 = vmax.f32 %v746_v23, 0.0  ;;  %v2020_v63 = vmul.f32 %v1782_v57, %v622_v21 }
  0xf0   : > { %v806_v4 = vmax.f32 %v798_v50, 0.0  ;;  %v528_v42 = vadd.f32 %v527_v22, %v1736_v35  ;;  %v2033_v19 = vmul.f32 %v2220_v15, %v664_v59  ;;  %v547_v47 = vmul.f32 %v1740_v37, %v457_v51 }
  0xf1   : > { %v2026_v8 = vmul.f32 %v1794_v62, %v754_v7  ;;  %v601_v21 = vmul.f32 %v1718_v26, %v457_v51  ;;  %v645_v23 = vmul.f32 %v1826_v20, %v457_v51  ;;  %v689_v50 = vmul.f32 %v1742_v38, %v457_v51 }
  0xf2   : > { %v2029_v1 = vmul.f32 %v2219_v53, %v806_v4  ;;  %v733_v16 = vmul.f32 %v1720_v27, %v457_v51  ;;  %v785_v7 = vmul.f32 %v1724_v29, %v457_v51  ;;  %v837_v4 = vmul.f32 %v1728_v31, %v457_v51 }
  0xf3   : > { %v889_v49 = vmul.f32 %v1744_v39, %v457_v51  ;;  %v564_v35 = vadd.f32 %v1722_v28, %v547_v47  ;;  %v613_v59 = vadd.f32 %v1726_v30, %v601_v21  ;;  %v657_v22 = vadd.f32 %v1738_v36, %v645_v23 }
  0xf4   : > { %v2047_v25 = vadd.f32 %v1820_v11, %v689_v50  ;;  %v745_v3 = vadd.f32 %v1730_v32, %v733_v16  ;;  %v797_v58 = vadd.f32 %v1734_v34, %v785_v7  ;;  %v2052_v10 = vadd.f32 %v1732_v33, %v837_v4 }
  0xf5   : > { %v2055_v9 = vadd.f32 %v1862_v45, %v889_v49  ;;  %v572_v51 = vmax.f32 %v564_v35, 0.0  ;;  %v621_v5 = vmax.f32 %v613_v59, 0.0  ;;  %v665_v47 = vmax.f32 %v657_v22, 0.0 }
  0xf6   : > { %v720_v21 = vmul.f32 %v1914_v6, %v708_v48  ;;  %v709_v23 = vmax.f32 %v2047_v25, 0.0  ;;  %v753_v13 = vmax.f32 %v745_v3, 0.0  ;;  %v805_v50 = vmax.f32 %v797_v58, 0.0 }
  0xf7   : > { %v857_v54 = vmax.f32 %v2052_v10, 0.0  ;;  %v589_v16 = vmul.f32 %v1746_v40, %v572_v51  ;;  %v909_v7 = vmax.f32 %v2055_v9, 0.0  ;;  %v549_v4 = vmul.f32 %v1740_v37, %v528_v42 }
  0xf8   : > { %v603_v49 = vmul.f32 %v1718_v26, %v528_v42  ;;  %v633_v35 = vmul.f32 %v1782_v57, %v621_v5  ;;  %v765_v59 = vmul.f32 %v1794_v62, %v753_v13  ;;  %v647_v48 = vmul.f32 %v1826_v20, %v528_v42 }
  0xf9   : > { %v691_v25 = vmul.f32 %v1742_v38, %v528_v42  ;;  %v566_v58 = vadd.f32 %v1722_v28, %v549_v4  ;;  %v735_v3 = vmul.f32 %v1720_v27, %v528_v42  ;;  %v787_v9 = vmul.f32 %v1724_v29, %v528_v42 }
  0xfa   : > { %v615_v10 = vadd.f32 %v1726_v30, %v603_v49  ;;  %v659_v37 = vadd.f32 %v1738_v36, %v647_v48  ;;  %v839_v5 = vmul.f32 %v1728_v31, %v528_v42  ;;  %v891_v13 = vmul.f32 %v1744_v39, %v528_v42 }
  0xfb   : > { %v703_v26 = vadd.f32 %v1820_v11, %v691_v25  ;;  %v574_v22 = vmax.f32 %v566_v58, 0.0  ;;  %v747_v38 = vadd.f32 %v1730_v32, %v735_v3  ;;  %v799_v28 = vadd.f32 %v1734_v34, %v787_v9 }
  0xfc   : > { %v623_v20 = vmax.f32 %v615_v10, 0.0  ;;  %v817_v30 = vmul.f32 %v2219_v53, %v805_v50  ;;  %v667_v51 = vmax.f32 %v659_v37, 0.0  ;;  %v851_v27 = vadd.f32 %v1732_v33, %v839_v5 }
  0xfd   : > { %v903_v29 = vadd.f32 %v1862_v45, %v891_v13  ;;  %v591_v36 = vmul.f32 %v1746_v40, %v574_v22  ;;  %v711_v11 = vmax.f32 %v703_v26, 0.0  ;;  %v755_v4 = vmax.f32 %v747_v38, 0.0  ;;  %v2222_v45 = vld [vmem:[#allocation8_spill] sm:$0xff] }
  0xfe   : > { %v807_v31 = vmax.f32 %v799_v28, 0.0  ;;  %v635_v39 = vmul.f32 %v1782_v57, %v623_v20  ;;  %v859_v42 = vmax.f32 %v851_v27, 0.0  ;;  %v772_v32 = vadd.f32 %v1987_v24, %v1978_v46 }
  0xff   : > { %v824_v34 = vadd.f32 %v2006_v44, %v1984_v0  ;;  %v767_v50 = vmul.f32 %v1794_v62, %v755_v4  ;;  %v911_v49 = vmax.f32 %v903_v29, 0.0  ;;  %v2221_v33 = vmax.f32 %v1967_v60, 0.0  ;;  %v2230_v4 = vld [vmem:[#allocation9_spill] sm:$0xff] }
 0x100   : > { %v2223_v40 = vmax.f32 %v1970_v17, 0.0  ;;  %v2224_v57 = vmax.f32 %v1996_v2, 0.0  ;;  %v2225_v46 = vmax.f32 %v1999_v61, 0.0  ;;  %v774_v62 = vadd.f32 %v2026_v8, %v2016_v18 }
 0x101   : > { %v868_v48 = vmul.f32 %v2222_v45, %v2221_v33  ;;  %v936_v58 = vadd.f32 %v824_v34, %v772_v32  ;;  %v819_v60 = vmul.f32 %v2219_v53, %v807_v31  ;;  %v826_v17 = vadd.f32 %v2029_v1, %v2020_v63 }
 0x102   : > { %v920_v25 = vmul.f32 %v1912_v56, %v2223_v40  ;;  %v678_v10 = vmul.f32 %v2220_v15, %v2224_v57  ;;  %v722_v0 = vmul.f32 %v1914_v6, %v2225_v46  ;;  %v2226_v44 = vmax.f32 %v2010_v55, 0.0 }
 0x103   : > { %v876_v24 = vadd.f32 %v868_v48, %v2033_v19  ;;  %v2227_v9 = vmax.f32 %v2013_v12, 0.0  ;;  %v677_v37 = vmul.f32 %v2220_v15, %v665_v47  ;;  %v773_v26 = vadd.f32 %v765_v59, %v589_v16 }
 0x104   : > { %v870_v2 = vmul.f32 %v2222_v45, %v2226_v44  ;;  %v928_v3 = vadd.f32 %v920_v25, %v720_v21  ;;  %v938_v53 = vadd.f32 %v826_v17, %v774_v62  ;;  %v825_v5 = vadd.f32 %v817_v30, %v633_v35 }
 0x105   : > { %v922_v61 = vmul.f32 %v1912_v56, %v2227_v9  ;;  %v944_v18 = vadd.f32 %v936_v58, %v876_v24  ;;  %v721_v13 = vmul.f32 %v1914_v6, %v709_v23  ;;  %v869_v63 = vmul.f32 %v2222_v45, %v857_v54 }
 0x106   : > { %v878_v8 = vadd.f32 %v870_v2, %v678_v10  ;;  %v921_v55 = vmul.f32 %v1912_v56, %v909_v7  ;;  %v937_v22 = vadd.f32 %v825_v5, %v773_v26  ;;  %v679_v12 = vmul.f32 %v2220_v15, %v667_v51  ;;  %v2228_v51 = vld [vmem:[#allocation11_spill] sm:$0xff] }
 0x107   : > { %v930_v19 = vadd.f32 %v922_v61, %v722_v0  ;;  %v952_v1 = vadd.f32 %v944_v18, %v928_v3  ;;  %v877_v20 = vadd.f32 %v869_v63, %v677_v37  ;;  %v723_v47 = vmul.f32 %v1914_v6, %v711_v11  ;;  %v2229_v11 = vld [vmem:[#allocation10_spill] sm:$0xff] }
 0x108   : > { %v946_v21 = vadd.f32 %v938_v53, %v878_v8  ;;  %v775_v16 = vadd.f32 %v767_v50, %v591_v36  ;;  %v827_v59 = vadd.f32 %v819_v60, %v635_v39  ;;  %v871_v28 = vmul.f32 %v2222_v45, %v859_v42 }
 0x109   : > { %v970_v38 = vadd.f32 %v1952_v41, %v952_v1  ;;  %v923_v23 = vmul.f32 %v1912_v56, %v911_v49  ;;  %v949_v54 = vadd.f32 %v1938_v43, %v1936_v14  ;;  %v929_v7 = vadd.f32 %v921_v55, %v721_v13 }
 0x10a   : > { %v954_v35 = vadd.f32 %v946_v21, %v930_v19  ;;  %v945_v30 = vadd.f32 %v937_v22, %v877_v20  ;;  %v939_v27 = vadd.f32 %v827_v59, %v775_v16  ;;  %v968_v15 = vadd.f32 %v1952_v41, %v1945_v52 }
 0x10b   : > { %v974_v6 = vmax.f32 %v2228_v51, %v970_v38  ;;  %v879_v36 = vadd.f32 %v871_v28, %v679_v12  ;;  %v951_v31 = vadd.f32 %v2230_v4, %v2229_v11  ;;  %v931_v32 = vadd.f32 %v923_v23, %v723_v47 }
 0x10c   : > { %v972_v29 = vadd.f32 %v1952_v41, %v954_v35  ;;  %v953_v39 = vadd.f32 %v945_v30, %v929_v7  ;;  %v967_v14 = vadd.f32 %v1952_v41, %v949_v54 }
 0x10d   : > { %v975_v42 = vrot.slane %v974_v6, 4  ;;  %v947_v34 = vadd.f32 %v939_v27, %v879_v36  ;;  %v969_v45 = vadd.f32 %v1952_v41, %v951_v31 }
 0x10e   : > { %v988_v56 = vmax.f32 %v968_v15, %v972_v29  ;;  %v971_v43 = vadd.f32 %v1952_v41, %v953_v39 }
 0x10f   : > { %v976_v50 = vmax.f32 %v974_v6, %v975_v42  ;;  %v955_v52 = vadd.f32 %v947_v34, %v931_v32 }
 0x110   : > { %v989_v49 = vrot.slane %v988_v56, 4  ;;  %v981_v33 = vmax.f32 %v967_v14, %v971_v43 }
 0x111   : > { %v977_v48 = vrot.slane %v976_v50, 2  ;;  %v973_v25 = vadd.f32 %v1952_v41, %v955_v52 }
 0x112   : > { %v990_v40 = vmax.f32 %v988_v56, %v989_v49  ;;  %v982_v58 = vrot.slane %v981_v33, 4 }
 0x113   : > { %v978_v57 = vmax.f32 %v976_v50, %v977_v48  ;;  %v995_v46 = vmax.f32 %v969_v45, %v973_v25 }
 0x114   : > { %v991_v10 = vrot.slane %v990_v40, 2  ;;  %v983_v0 = vmax.f32 %v981_v33, %v982_v58 }
 0x115   : > { %v979_v62 = vrot.slane %v978_v57, 1  ;;  %v996_v24 = vrot.slane %v995_v46, 4 }
 0x116   : > { %v992_v60 = vmax.f32 %v990_v40, %v991_v10  ;;  %v984_v17 = vrot.slane %v983_v0, 2 }
 0x117   : > { %v980_v44 = vmax.f32 %v978_v57, %v979_v62  ;;  %v997_v3 = vmax.f32 %v995_v46, %v996_v24  ;;  %v1141_v24 = vpop.f32.mrf.mxu0 }
 0x118   : > { %v993_v2 = vrot.slane %v992_v60, 1  ;;  %v985_v9 = vmax.f32 %v983_v0, %v984_v17 }
 0x119   : > { %v1002_v61 = vsub.f32 %v2228_v51, %v980_v44  ;;  %v1006_v37 = vsub.f32 %v970_v38, %v980_v44  ;;  %v998_v18 = vrot.slane %v997_v3, 2  ;;  %v1218_v44 = vpop.f32.mrf.mxu1 }
 0x11a   : > { %v994_v26 = vmax.f32 %v992_v60, %v993_v2  ;;  %v986_v8 = vrot.slane %v985_v9, 1  ;;  %v1143_v2 = vpop.f32.mrf.mxu0 }
 0x11b   : > { %v1010_v41 = vmul.f32 1.442695, %v1002_v61  ;;  %v1018_v53 = vmul.f32 1.442695, %v1006_v37  ;;  %v999_v63 = vmax.f32 %v997_v3, %v998_v18 }
 0x11c   : > { %v1004_v5 = vsub.f32 %v968_v15, %v994_v26  ;;  %v1008_v19 = vsub.f32 %v972_v29, %v994_v26  ;;  %v987_v13 = vmax.f32 %v985_v9, %v986_v8  ;;  %v1220_v9 = vpop.f32.mrf.mxu1  ;;  %v1147_v18 = vpop.f32.mrf.mxu0 }
 0x11d   : > { %1438 = vpow2.f32 %v1010_v41  ;;  %v1000_v12 = vrot.slane %v999_v63, 1 }
 0x11e   : > { %v1014_v55 = vmul.f32 1.442695, %v1004_v5  ;;  %v1022_v1 = vmul.f32 1.442695, %v1008_v19  ;;  %1440 = vpow2.f32 %v1018_v53  ;;  %v1003_v21 = vsub.f32 %v967_v14, %v987_v13  ;;  %v1224_v19 = vpop.f32.mrf.mxu1 }
 0x11f   : > { %v1007_v22 = vsub.f32 %v971_v43, %v987_v13  ;;  %v1001_v16 = vmax.f32 %v999_v63, %v1000_v12 }
 0x120   : > { %1442 = vpow2.f32 %v1014_v55  ;;  %v1012_v20 = vmul.f32 1.442695, %v1003_v21 }
 0x121   : > { %1444 = vpow2.f32 %v1022_v1  ;;  %v1020_v47 = vmul.f32 1.442695, %v1007_v22  ;;  %v1005_v59 = vsub.f32 %v969_v45, %v1001_v16  ;;  %v1009_v38 = vsub.f32 %v973_v25, %v1001_v16  ;;  %v1149_v22 = vpop.f32.mrf.mxu0 }
 0x122   : > { %1446 = vpow2.f32 %v1012_v20 }
 0x123   : > { %1448 = vpow2.f32 %v1020_v47  ;;  %v1016_v35 = vmul.f32 1.442695, %v1005_v59  ;;  %v1024_v28 = vmul.f32 1.442695, %v1009_v38  ;;  %v1226_v38 = vpop.f32.mrf.mxu1 }
 0x125   : > { %1450 = vpow2.f32 %v1016_v35 }
 0x126   : > { %1452 = vpow2.f32 %v1024_v28 }
 0x12a   : > { %v1439_v23 = vpop.eup %1438 }
 0x12b   : > { %v1441_v54 = vpop.eup %1440 }
 0x12c   : > { %v1026_v30 = vadd.f32 %v1441_v54, %v1439_v23 }
 0x12d   : > { %v1443_v7 = vpop.eup %1442 }
 0x12e   : > { %v1445_v27 = vpop.eup %1444  ;;  %v1027_v15 = vrot.slane %v1026_v30, 4 }
 0x12f   : > { %v1040_v51 = vadd.f32 %v1445_v27, %v1443_v7  ;;  %v1447_v6 = vpop.eup %1446 }
 0x130   : > { %v1449_v29 = vpop.eup %1448  ;;  %v1028_v36 = vadd.f32 %v1027_v15, %v1026_v30 }
 0x131   : > { %v1041_v11 = vrot.slane %v1040_v51, 4  ;;  %v1033_v4 = vadd.f32 %v1449_v29, %v1447_v6 }
 0x132   : > { %v1029_v31 = vrot.slane %v1028_v36, 2  ;;  %v1451_v42 = vpop.eup %1450 }
 0x133   : > { %v1042_v39 = vadd.f32 %v1041_v11, %v1040_v51  ;;  %v1034_v56 = vrot.slane %v1033_v4, 4  ;;  %v1453_v32 = vpop.eup %1452 }
 0x134   : > { %v1030_v34 = vadd.f32 %v1029_v31, %v1028_v36  ;;  %v1047_v50 = vadd.f32 %v1453_v32, %v1451_v42 }
 0x135   : > { %v1043_v14 = vrot.slane %v1042_v39, 2  ;;  %v1035_v43 = vadd.f32 %v1034_v56, %v1033_v4 }
 0x136   : > { %v1031_v49 = vrot.slane %v1030_v34, 1  ;;  %v1048_v45 = vrot.slane %v1047_v50, 4 }
 0x137   : > { %v1044_v52 = vadd.f32 %v1043_v14, %v1042_v39  ;;  %v1036_v33 = vrot.slane %v1035_v43, 2 }
 0x138   : > { %v1032_v48 = vadd.f32 %v1031_v49, %v1030_v34  ;;  %v1049_v58 = vadd.f32 %v1048_v45, %v1047_v50 }
 0x139   : > { %v1045_v40 = vrot.slane %v1044_v52, 1  ;;  %v1037_v25 = vadd.f32 %v1036_v33, %v1035_v43 }
 0x13a   : > { %1454 = vrcp.f32 %v1032_v48  ;;  %v1050_v46 = vrot.slane %v1049_v58, 2 }
 0x13b   : > { %v1046_v57 = vadd.f32 %v1045_v40, %v1044_v52  ;;  %v1038_v10 = vrot.slane %v1037_v25, 1 }
 0x13c   : > { %v1051_v62 = vadd.f32 %v1050_v46, %v1049_v58 }
 0x13d   : > { %1456 = vrcp.f32 %v1046_v57  ;;  %v1039_v0 = vadd.f32 %v1038_v10, %v1037_v25 }
 0x13e   : > { %v1052_v60 = vrot.slane %v1051_v62, 1 }
 0x13f   : > { %1458 = vrcp.f32 %v1039_v0 }
 0x140   : > { %v1053_v17 = vadd.f32 %v1052_v60, %v1051_v62 }
 0x142   : > { %1460 = vrcp.f32 %v1053_v17 }
 0x147   : > { %v1455_v3 = vpop.eup %1454 }
 0x148   : > { %v1058_v61 = vmul.f32 %v1455_v3, %v1439_v23  ;;  %v1062_v37 = vmul.f32 %v1455_v3, %v1441_v54 }
 0x14a   : > { %v1457_v26 = vpop.eup %1456  ;;  %v1229_v8 = vmul.f32 %v1141_v24, %v1058_v61  ;;  %v1233_v53 = vmul.f32 %v1147_v18, %v1062_v37 }
 0x14b   : > { %v1060_v41 = vmul.f32 %v1457_v26, %v1443_v7  ;;  %v1064_v5 = vmul.f32 %v1457_v26, %v1445_v27 }
 0x14c   : > { %v1459_v13 = vpop.eup %1458  ;;  %1237 = vst [vmem:[%s344_s18] sm:$0xff] %v1229_v8  ;;  %1241 = vst [vmem:[%s344_s18 + $0x20] sm:$0xff] %v1233_v53 }
 0x14d   : > { %v1231_v63 = vmul.f32 %v1218_v44, %v1060_v41  ;;  %v1235_v55 = vmul.f32 %v1224_v19, %v1064_v5  ;;  %v1059_v1 = vmul.f32 %v1459_v13, %v1447_v6  ;;  %v1063_v21 = vmul.f32 %v1459_v13, %v1449_v29 }
 0x14f   : > { %1239 = vst [vmem:[%s344_s18 + $0x10] sm:$0xff] %v1231_v63  ;;  %1243 = vst [vmem:[%s344_s18 + $0x30] sm:$0xff] %v1235_v55  ;;  %v1230_v12 = vmul.f32 %v1143_v2, %v1059_v1  ;;  %v1234_v20 = vmul.f32 %v1149_v22, %v1063_v21  ;;  %v1461_v47 = vpop.eup %1460 }
 0x150   : > { %v1061_v16 = vmul.f32 %v1461_v47, %v1451_v42  ;;  %v1065_v59 = vmul.f32 %v1461_v47, %v1453_v32 }
 0x151   : > { %1238 = vst [vmem:[%s344_s18 + $0x8] sm:$0xff] %v1230_v12  ;;  %1242 = vst [vmem:[%s344_s18 + $0x28] sm:$0xff] %v1234_v20 }
 0x152   : > { %v1232_v35 = vmul.f32 %v1220_v9, %v1061_v16  ;;  %v1236_v28 = vmul.f32 %v1226_v38, %v1065_v59 }
 0x154   : > { %1240 = vst [vmem:[%s344_s18 + $0x18] sm:$0xff] %v1232_v35  ;;  %1244 = vst [vmem:[%s344_s18 + $0x38] sm:$0xff] %v1236_v28 }
 0x155   : > { %1475 = shalt.err (!%p1472_p3)
}
 0x156   : > { %s1476_s10 = scalar_lea.hbm %s2143_s26, 1024  ;;  %s1480_s18 = scalar_lea.hbm %s2196_s9, 2048 }
 0x157   : > { %p1477_p4 = scmp.ne.s32.totalorder %s2143_s26, %s1476_s10  ;;  %p1481_p9 = scmp.lt.s32.totalorder %s2143_s26, %s2196_s9 }
 0x158   : > { %p1482_p10 = scmp.lt.s32.totalorder %s1480_s18, %s1476_s10 }
 0x159   : > { %p1478_p7 = pnand %p1477_p4, %p1628_p5 }
 0x15a   : > { %p1483_p11 = por %p1482_p10, %p1481_p9 }
 0x15b   : > { %p1479_p8 = pneg %p1478_p7 }
 0x15d   : > { %p1484_p12 = pnand %p1483_p11, %p1479_p8 }
 0x15f   : > { %1487 = shalt.err (!%p1484_p12)
}
 0x160   : > { %s1534_s25 = smov 512   ;;  %s1535_s27 = smov 1024  }
 0x161   : > { %s1536_s28 = smov 32  }
 0x162   : > { %1362 = dma.vmem_to_hbm [thread:$0]  (%p1628_p5), %s2138_s22, 1024, %s2143_s26, %s2147_s8, %s1534_s25, %s1535_s27, %s1536_s28  }
 0x163 PF: > { %p1368_p13 = scmp.ge.s32.totalorder %s1522_s14, 2  ;;  %s1274_s29 = sand.u32 1, %s1510_s11  }
 0x164   : > { %s1275_s30 = scalar_lea.sflag [#allocation4], %s1274_s29 }
 0x165   : > { %p1365_p0 = pnand %p1368_p13, %p1632_p6 }
 0x167   : > { %p1366_p1 = pneg %p1365_p0 }
 0x169   : > { %1505 = dma.done.wait (%p1366_p1), %s1275_s30, 1024  }
 0x16a   : > { %1507 = vsyncadd (%p1366_p1), %s1275_s30, 4294966272  ;;  %p21_p2 = scmp.ge.s32.totalorder %s1615_s16, 4   ;;  %s2231_s11 = smov %s1514_s12 }
 0x16b   : > { %s2232_s12 = smov %s1518_s13  ;;  %s2233_s13 = smov %s1626_s19 }
 0x16c   : > { %s2234_s14 = smov %s1615_s16  ;;  %23 = sbr.rel (!%p21_p2) target bundleno = 6 (0x6), region = 94 }
 0x171   :  { %1280 = vsyncpa [#allocation4], 1 }
 0x172   :  { %1282 = vsyncpa [#allocation4 + $0x1], 1 }

</bundles_post_ra>
